<compile_context>
chip_gen: v7x
topology: tpu7x:2x2x1
jax: 0.10.0
libtpu: 0.0.40
codegen_flags: <defaults>
</compile_context>

<pallas_src>
import functools

import jax
import jax.numpy as jnp
import numpy as np
from jax.experimental import pallas as pl
from jax.experimental.pallas import tpu as pltpu

# --- model hyperparameters (from the PyTorch script) ---
BLOCK_SIZE = 8       # block_size (max sequence length T)
N_EMBD = 32          # n_embd
HEAD_SIZE = 32       # sa_head = Head(n_embd)
VOCAB_SIZE = 65      # len(sorted(set(text))) for tiny-shakespeare
VOCAB_PAD = 128      # vocab / lane padding (one full lane tile)

# --- packed weight-slab layout (sublane-stacked, 128 lanes, bf16) ---
# Every segment offset is a multiple of 16 so bf16 sublane packing never straddles a slice.
TOK_OFF = 0                          # (VOCAB_PAD, N_EMBD)  token embedding table (vocab-padded)
POS_OFF = TOK_OFF + VOCAB_PAD        # (BLOCK_SIZE, N_EMBD) position embedding table
A_OFF = POS_OFF + 16                 # (N_EMBD, N_EMBD)     A    = Wq @ Wk^T
VL_OFF = A_OFF + N_EMBD              # (N_EMBD, VOCAB_PAD)  W_vl = Wv @ W_lm   (vocab-padded)
B_OFF = VL_OFF + N_EMBD              # (1, VOCAB_PAD)       lm_head bias       (vocab-padded)
SLAB_ROWS = B_OFF + 16               # 224 rows total


def _bigram_kernel(onehot_ref, w_ref, out_ref, *, seq_len, n_embd):
    """One batch row per grid step: onehot (T, V_PAD) bf16, slab (SLAB_ROWS, 128) bf16."""
    f32 = jnp.float32
    bf16 = jnp.bfloat16

    # --- fused token-embedding gather (MXU) + position embedding ---
    tok_tab = w_ref[TOK_OFF:TOK_OFF + VOCAB_PAD, :n_embd]             # (V_PAD, C) bf16
    pos = w_ref[POS_OFF:POS_OFF + seq_len, :n_embd]                   # (T, C)     bf16
    tok_emb = jnp.dot(onehot_ref[...], tok_tab,
                      preferred_element_type=f32)                     # (T, C) f32
    x = tok_emb + pos.astype(f32)                                     # (T, C) f32
    xb = x.astype(bf16)

    # --- attention scores via folded A = Wq @ Wk^T:  wei = (x A) x^T * scale ---
    a_mat = w_ref[A_OFF:A_OFF + n_embd, :n_embd]                      # (C, C) bf16
    xa = jnp.dot(xb, a_mat, preferred_element_type=f32)               # (T, C) f32
    wei = jax.lax.dot_general(
        xa.astype(bf16), xb,
        dimension_numbers=(((1,), (1,)), ((), ())),
        preferred_element_type=f32)                                   # (T, T) f32
    # matches PyTorch's `C ** (-0.5)` where C == n_embd (NOT head_size; they coincide here)
    wei = wei * jnp.float32(n_embd) ** -0.5

    # --- causal mask + stable softmax (all f32; diagonal always unmasked -> no -inf rows) ---
    row = jax.lax.broadcasted_iota(jnp.int32, (seq_len, seq_len), 0)
    col = jax.lax.broadcasted_iota(jnp.int32, (seq_len, seq_len), 1)
    wei = jnp.where(col <= row, wei, -jnp.inf)
    m = jnp.max(wei, axis=-1, keepdims=True)
    e = jnp.exp(wei - m)
    p = e * pl.reciprocal(jnp.sum(e, axis=-1, keepdims=True), approx=True)

    # --- folded value projection + lm_head:  logits = p (x W_vl) + b ---
    w_vl = w_ref[VL_OFF:VL_OFF + n_embd, :]                           # (C, V_PAD) bf16
    xv = jnp.dot(xb, w_vl, preferred_element_type=f32)                # (T, V_PAD) f32
    att = jnp.dot(p.astype(bf16), xv.astype(bf16),
                  preferred_element_type=f32)                         # (T, V_PAD) f32
    b_lm = w_ref[B_OFF:B_OFF + 1, :].astype(f32)                      # (1, V_PAD)
    out_ref[...] = (att + b_lm).astype(out_ref.dtype)                 # lane-dense, unmasked vst


def prepare_params(params):
    """One-time weight prep: fold Wq@Wk^T and Wv@W_lm, vocab/lane-pad, pack into one bf16 slab."""
    C, V, T = N_EMBD, VOCAB_SIZE, BLOCK_SIZE
    a_mat = params["w_query"] @ params["w_key"].T              # (C, C)
    w_vl = params["w_value"] @ params["w_lm"]                  # (C, V); padded cols stay 0
    slab = jnp.zeros((SLAB_ROWS, VOCAB_PAD), jnp.float32)
    slab = slab.at[TOK_OFF:TOK_OFF + V, :C].set(params["tok_table"])
    slab = slab.at[POS_OFF:POS_OFF + T, :C].set(params["pos_table"])
    slab = slab.at[A_OFF:A_OFF + C, :C].set(a_mat)
    slab = slab.at[VL_OFF:VL_OFF + C, :V].set(w_vl)
    slab = slab.at[B_OFF, :V].set(params["b_lm"][0])
    return {"slab": slab.astype(jnp.bfloat16)}                 # bf16: half the weight DMA bytes


def bigram_forward_pallas(idx, kparams, *, return_padded_logits=False):
    """Forward pass: idx (B, T) int32 -> (logits, None) -- the targets=None path of the module."""
    B, T = idx.shape
    assert T <= BLOCK_SIZE

    # Lane-dense one-hot built in XLA (tiny); the gather itself stays an MXU matmul in-kernel.
    # Out-of-range token ids (>= VOCAB_SIZE) silently produce an all-zero embedding row.
    onehot = (idx[..., None] == jnp.arange(VOCAB_PAD, dtype=idx.dtype)).astype(jnp.bfloat16)

    kernel = functools.partial(_bigram_kernel, seq_len=T, n_embd=N_EMBD)

    logits_pad = pl.pallas_call(
        kernel,
        out_shape=jax.ShapeDtypeStruct((B, T, VOCAB_PAD), jnp.float32),
        grid=(B,),
        in_specs=[
            pl.BlockSpec((None, T, VOCAB_PAD), lambda b: (b, 0, 0)),   # per-batch one-hot
            pl.BlockSpec((SLAB_ROWS, VOCAB_PAD), lambda b: (0, 0)),    # weights: VMEM-resident
        ],
        out_specs=pl.BlockSpec((None, T, VOCAB_PAD), lambda b: (b, 0, 0)),
        compiler_params=pltpu.CompilerParams(
            dimension_semantics=("parallel",)),    # lets v7x shard the batch across both TCs
    )(onehot, kparams["slab"])

    if return_padded_logits:
        # Padded vocab columns are exactly 0; mask them in the downstream softmax/CE instead of
        # paying for an unaligned 65-lane slice here.
        return logits_pad, None
    logits = logits_pad[:, :, :VOCAB_SIZE]
    return logits, None
    # TODO(synk): the targets / F.cross_entropy loss branch and the generate() multinomial
    #             sampling loop are not fused here (forward, targets=None only); fusing
    #             generate() into the kernel would amortize the launch+DMA latency that
    #             dominates this toy-size call.


def bigram_forward_ref(idx, params):
    """Pure-JAX f32 reference mirroring the PyTorch forward exactly (unfused weights)."""
    B, T = idx.shape
    tok_emb = jnp.take(params["tok_table"], idx, axis=0)
    pos_emb = jnp.take(params["pos_table"], jnp.arange(T), axis=0)
    x = tok_emb + pos_emb                                    # (B, T, C)
    k = x @ params["w_key"]
    q = x @ params["w_query"]
    v = x @ params["w_value"]
    wei = jnp.einsum("btc,bsc->bts", q, k) * (N_EMBD ** -0.5)
    mask = jnp.tril(jnp.ones((T, T), dtype=bool))
    wei = jnp.where(mask, wei, -jnp.inf)
    wei = jax.nn.softmax(wei, axis=-1)
    out = jnp.einsum("bts,bsh->bth", wei, v)
    logits = out @ params["w_lm"] + params["b_lm"][0]
    return logits


def init_params(key):
    """Deterministic synthetic parameters with the shapes nn.Module.__init__ implies."""
    ks = jax.random.split(key, 7)
    s = 0.02
    return {
        # nn.Embedding(vocab_size, n_embd) / nn.Embedding(block_size, n_embd)
        "tok_table": s * jax.random.normal(ks[0], (VOCAB_SIZE, N_EMBD), jnp.float32),
        "pos_table": s * jax.random.normal(ks[1], (BLOCK_SIZE, N_EMBD), jnp.float32),
        # nn.Linear(n_embd, head_size, bias=False).weight is (head_size, n_embd);
        # stored pre-transposed to (n_embd, head_size) so the math is x @ W.
        "w_key": s * jax.random.normal(ks[2], (N_EMBD, HEAD_SIZE), jnp.float32),
        "w_query": s * jax.random.normal(ks[3], (N_EMBD, HEAD_SIZE), jnp.float32),
        "w_value": s * jax.random.normal(ks[4], (N_EMBD, HEAD_SIZE), jnp.float32),
        # nn.Linear(n_embd, vocab_size): weight (vocab, n_embd) -> stored (n_embd, vocab)
        "w_lm": s * jax.random.normal(ks[5], (HEAD_SIZE, VOCAB_SIZE), jnp.float32),
        "b_lm": s * jax.random.normal(ks[6], (1, VOCAB_SIZE), jnp.float32),
    }


if __name__ == "__main__":
    key = jax.random.PRNGKey(0)
    pkey, ikey = jax.random.split(key)
    params = init_params(pkey)
    kparams = prepare_params(params)          # one-time weight prep (fold + pad + pack, bf16)

    B, T = 4, BLOCK_SIZE                      # small batch, T = block_size = 8
    idx = jax.random.randint(ikey, (B, T), 0, VOCAB_SIZE, dtype=jnp.int32)

    forward = jax.jit(bigram_forward_pallas)
    logits, loss = forward(idx, kparams)
    logits = jax.block_until_ready(logits)

    ref = jax.block_until_ready(bigram_forward_ref(idx, params))
    assert logits.shape == (B, T, VOCAB_SIZE)
    assert loss is None
    # Tolerance relaxed vs 1e-5: bf16 MXU operands + Wq@Wk^T / Wv@W_lm folding change
    # float precision/associativity (dominant error ~1.5e-4 abs from bf16 weight rounding).
    np.testing.assert_allclose(np.asarray(logits), np.asarray(ref), rtol=2e-2, atol=2e-3)

    print("KERNEL_OK")
</pallas_src>

<mosaic_0001>
module attributes {stable_mosaic.version = 11 : i64} {
  func.func @_bigram_kernel(%arg0: i32, %arg1: memref<1x8x128xbf16, #tpu.memory_space<vmem>>, %arg2: memref<224x128xbf16, #tpu.memory_space<vmem>>, %arg3: memref<1x8x128xf32, #tpu.memory_space<vmem>>) attributes {dimension_semantics = [#tpu.dimension_semantics<parallel>], iteration_bounds = array<i64: 4>, scalar_prefetch = 0 : i64, scratch_operands = 0 : i64, tpu.core_type = #tpu.core_type<tc>, window_params = [{transform_indices = @transform_0, window_bounds = array<i64: 1, 8, 128>}, {pipeline_mode = #tpu.pipeline_mode<synchronous>, transform_indices = @transform_1, window_bounds = array<i64: 224, 128>}, {transform_indices = @transform_2, window_bounds = array<i64: 1, 8, 128>}]} {
    %c0 = arith.constant 0 : index
    %c0_0 = arith.constant 0 : index
    %0 = vector.load %arg2[%c0, %c0_0] : memref<224x128xbf16, #tpu.memory_space<vmem>>, vector<128x32xbf16>
    %c128 = arith.constant 128 : index
    %c0_1 = arith.constant 0 : index
    %1 = vector.load %arg2[%c128, %c0_1] : memref<224x128xbf16, #tpu.memory_space<vmem>>, vector<8x32xbf16>
    %c0_2 = arith.constant 0 : index
    %c0_3 = arith.constant 0 : index
    %c0_4 = arith.constant 0 : index
    %2 = vector.load %arg1[%c0_2, %c0_3, %c0_4] : memref<1x8x128xbf16, #tpu.memory_space<vmem>>, vector<1x8x128xbf16>
    %3 = vector.shape_cast %2 : vector<1x8x128xbf16> to vector<8x128xbf16>
    %cst = arith.constant dense<0.000000e+00> : vector<8x32xf32>
    %4 = tpu.matmul %3, %0, %cst {dimension_numbers = #tpu.dot_dimension_numbers<[1], [0], [0], [1], [0, 0, 1, 1], [], []>} : vector<8x128xbf16>, vector<128x32xbf16>, vector<8x32xf32> -> vector<8x32xf32>
    %5 = arith.extf %1 : vector<8x32xbf16> to vector<8x32xf32>
    %6 = arith.addf %4, %5 : vector<8x32xf32>
    %7 = arith.truncf %6 : vector<8x32xf32> to vector<8x32xbf16>
    %c144 = arith.constant 144 : index
    %c0_5 = arith.constant 0 : index
    %8 = vector.load %arg2[%c144, %c0_5] : memref<224x128xbf16, #tpu.memory_space<vmem>>, vector<32x32xbf16>
    %cst_6 = arith.constant dense<0.000000e+00> : vector<8x32xf32>
    %9 = tpu.matmul %7, %8, %cst_6 {dimension_numbers = #tpu.dot_dimension_numbers<[1], [0], [0], [1], [0, 0, 1, 1], [], []>} : vector<8x32xbf16>, vector<32x32xbf16>, vector<8x32xf32> -> vector<8x32xf32>
    %10 = arith.truncf %9 : vector<8x32xf32> to vector<8x32xbf16>
    %cst_7 = arith.constant dense<0.000000e+00> : vector<8x8xf32>
    %11 = tpu.matmul %10, %7, %cst_7 {dimension_numbers = #tpu.dot_dimension_numbers<[1], [1], [0], [0], [0, 0, 1, 0], [], []>} : vector<8x32xbf16>, vector<8x32xbf16>, vector<8x8xf32> -> vector<8x8xf32>
    %cst_8 = arith.constant 3.200000e+01 : f32
    %cst_9 = arith.constant -5.000000e-01 : f32
    %12 = math.powf %cst_8, %cst_9 : f32
    %13 = vector.broadcast %12 : f32 to vector<8x8xf32>
    %14 = arith.mulf %11, %13 : vector<8x8xf32>
    %15 = tpu.iota {dimensions = array<i32: 0>} : vector<8x8xi32>
    %16 = tpu.iota {dimensions = array<i32: 1>} : vector<8x8xi32>
    %17 = arith.cmpi sle, %16, %15 : vector<8x8xi32>
    %cst_10 = arith.constant 0xFF800000 : f32
    %18 = vector.broadcast %cst_10 : f32 to vector<8x8xf32>
    %19 = arith.select %17, %14, %18 : vector<8x8xi1>, vector<8x8xf32>
    %cst_11 = arith.constant dense<0xFF800000> : vector<8xf32>
    %20 = vector.multi_reduction <maximumf>, %19, %cst_11 [1] : vector<8x8xf32> to vector<8xf32>
    %21 = vector.shape_cast %20 : vector<8xf32> to vector<8x1xf32>
    %22 = vector.broadcast %21 : vector<8x1xf32> to vector<8x8xf32>
    %23 = arith.subf %19, %22 : vector<8x8xf32>
    %24 = math.exp %23 : vector<8x8xf32>
    %cst_12 = arith.constant dense<0.000000e+00> : vector<8xf32>
    %25 = vector.multi_reduction <add>, %24, %cst_12 [1] : vector<8x8xf32> to vector<8xf32>
    %26 = vector.shape_cast %25 : vector<8xf32> to vector<8x1xf32>
    %27 = tpu.reciprocal %26 {approx = true} : vector<8x1xf32> -> vector<8x1xf32>
    %28 = vector.broadcast %27 : vector<8x1xf32> to vector<8x8xf32>
    %29 = arith.mulf %24, %28 : vector<8x8xf32>
    %c176 = arith.constant 176 : index
    %c0_13 = arith.constant 0 : index
    %30 = vector.load %arg2[%c176, %c0_13] : memref<224x128xbf16, #tpu.memory_space<vmem>>, vector<32x128xbf16>
    %cst_14 = arith.constant dense<0.000000e+00> : vector<8x128xf32>
    %31 = tpu.matmul %7, %30, %cst_14 {dimension_numbers = #tpu.dot_dimension_numbers<[1], [0], [0], [1], [0, 0, 1, 1], [], []>} : vector<8x32xbf16>, vector<32x128xbf16>, vector<8x128xf32> -> vector<8x128xf32>
    %32 = arith.truncf %29 : vector<8x8xf32> to vector<8x8xbf16>
    %33 = arith.truncf %31 : vector<8x128xf32> to vector<8x128xbf16>
    %cst_15 = arith.constant dense<0.000000e+00> : vector<8x128xf32>
    %34 = tpu.matmul %32, %33, %cst_15 {dimension_numbers = #tpu.dot_dimension_numbers<[1], [0], [0], [1], [0, 0, 1, 1], [], []>} : vector<8x8xbf16>, vector<8x128xbf16>, vector<8x128xf32> -> vector<8x128xf32>
    %c208 = arith.constant 208 : index
    %c0_16 = arith.constant 0 : index
    %35 = vector.load %arg2[%c208, %c0_16] : memref<224x128xbf16, #tpu.memory_space<vmem>>, vector<1x128xbf16>
    %36 = arith.extf %35 : vector<1x128xbf16> to vector<1x128xf32>
    %37 = vector.broadcast %36 : vector<1x128xf32> to vector<8x128xf32>
    %38 = arith.addf %34, %37 : vector<8x128xf32>
    %c0_17 = arith.constant 0 : index
    %c0_18 = arith.constant 0 : index
    %c0_19 = arith.constant 0 : index
    %39 = vector.load %arg3[%c0_17, %c0_18, %c0_19] : memref<1x8x128xf32, #tpu.memory_space<vmem>>, vector<1x8x128xf32>
    %40 = vector.shape_cast %39 : vector<1x8x128xf32> to vector<8x128xf32>
    %41 = vector.shape_cast %38 : vector<8x128xf32> to vector<1x8x128xf32>
    tpu.vector_store %arg3[%c0_17, %c0_18, %c0_19], %41 {strides = array<i32>} : memref<1x8x128xf32, #tpu.memory_space<vmem>>, vector<1x8x128xf32>,
    return
  }
  func.func @transform_0(%arg0: i32) -> (i32, i32, i32) {
    %c0_i32 = arith.constant 0 : i32
    %c0_i32_0 = arith.constant 0 : i32
    %c0_i32_1 = arith.constant 0 : i32
    return %arg0, %c0_i32, %c0_i32_0 : i32, i32, i32
  }
  func.func @transform_1(%arg0: i32) -> (i32, i32) {
    %c0_i32 = arith.constant 0 : i32
    %c0_i32_0 = arith.constant 0 : i32
    %c0_i32_1 = arith.constant 0 : i32
    return %c0_i32, %c0_i32_0 : i32, i32
  }
  func.func @transform_2(%arg0: i32) -> (i32, i32, i32) {
    %c0_i32 = arith.constant 0 : i32
    %c0_i32_0 = arith.constant 0 : i32
    %c0_i32_1 = arith.constant 0 : i32
    return %arg0, %c0_i32, %c0_i32_0 : i32, i32, i32
  }
}

</mosaic_0001>

<bundles_post_ra>
// kernel: bigram_forward_pallas.1
= control target key start
LH: loop header
LB: loop body
LE: loop exit
PB: predicated region body
PF: predicated region fallthrough
CT: control target
= control target key end

     0   :  { %7 = vsyncpa [#allocation3], 0  ;;  %s1031_s0 = inlined_call_operand.vmem [shape: bf16[4,8,128], index: 0, kind: input, shape index: {}]   ;;  %s1032_s1 = inlined_call_operand.hbm [shape: bf16[224,128], index: 1, kind: input, shape index: {}]   ;;  %s1033_s2 = inlined_call_operand.hbm [shape: f32[4,8,128], index: 2, kind: output, shape index: {}]  }
   0x1   :  { %8 = vsyncpa [#allocation4], 0 }
   0x2   :  { %10 = vsyncpa [#allocation4 + $0x1], 0  ;;  %s865_s9 = smov 0   ;;  %s867_s10 = smov 0  }
   0x3   :  { %s869_s11 = smov 0   ;;  %s871_s12 = smov 0  }
   0x4 LB: > { %s886_s13 = sadd.s32 4294967295, %s842_s12   ;;  %s583_s14 = sadd.s32 4294967294, %s842_s12   ;;  %s842_s12 = sphi %s871_s12, %s1049_s12   ;;  %s838_s11 = sphi %s869_s11, %s1048_s11   ;;  %s834_s10 = sphi %s867_s10, %s1047_s10   ;;  %s830_s9 = sphi %s865_s9, %s1046_s9  }
   0x5   : > { %s890_s15 = sadd.s32 1, %s842_s12   ;;  %s70_s16 = sadd.s32 1, %s838_s11 }
   0x6   : > { %s67_s17 = ssub.s32 %s842_s12, %s890_s15  ;;  %p80_p0 = scmp.ne.s32.totalorder %s838_s11, %s834_s10 }
   0x7   : > { %p68_p1 = scmp.eq.s32.totalorder %s67_s17, 0  ;;  %p81_p2 = scmp.eq.s32.totalorder %s886_s13, 3 }
   0x8   : > { %p86_p3 = scmp.ne.s32.totalorder %s834_s10, %s830_s9  ;;  %p87_p4 = scmp.eq.s32.totalorder %s583_s14, 3 }
   0x9   : > { %s901_s18 = scalar_select %p68_p1, %s838_s11, %s70_s16  }
   0xa   : > { %p903_p5 = por %p81_p2, %p80_p0  ;;  %p907_p6 = por %p87_p4, %p86_p3 }
   0xb   : > { %p584_p7 = scmp.ge.s32.totalorder %s842_s12, 1  ;;  %p94_p8 = scmp.lt.s32.totalorder %s842_s12, 5 }
   0xc   : > { %s1037_s19 = scalar_select %p903_p5, 1, 0 }
   0xd   : > { %s1038_s20 = scalar_select %p907_p6, 1, 0 }
   0xe   : > { %p1034_p9 = scmp.eq.s32.totalorder %s886_s13, 0  ;;  %p914_p10 = pnand %p584_p7, %p94_p8 }
   0xf   : > { %s844_s22 = smov [#allocation2]   ;;  %s748_s27 = scalar_lea.hbm %s1032_s1, 1792 }
  0x10   : > { %s1039_s21 = scalar_select %p914_p10, 1, 0 }
  0x11   : > { %s106_s23 = sshll.u32 %s844_s22, 4  ;;  %p684_p11 = pneg %p914_p10  ;;  %s107_s23 = int_to_ptr.vmem [resolvable:$true] %s106_s23 }
  0x12   : > { %p749_p13 = scmp.ne.s32.totalorder %s1032_s1, %s748_s27  ;;  %p755_p3 = scmp.lt.u32.totalorder %s748_s27, %s1032_s1 }
  0x13   : > { %p922_p12 = pnand %p1034_p9, %p684_p11 }
  0x15   : > { %p750_p0 = pneg %p922_p12 }
  0x17   : > { %p751_p1 = pnand %p750_p0, %p749_p13 }
  0x19   : > { %p752_p2 = pneg %p751_p1 }
  0x1b   : > { %p757_p4 = pnand %p755_p3, %p752_p2 }
  0x1d   : > { %760 = shalt.err (!%p757_p4)
}
  0x1e   : > { %s761_s4 = scalar_lea.vmem %s107_s23, 1792  ;;  %p769_p9 = scmp.lt.s32.totalorder %s107_s23, %s107_s23 }
  0x1f   : > { %p762_p7 = scmp.ne.s32.totalorder %s107_s23, %s761_s4  ;;  %p770_p6 = scmp.lt.s32.totalorder %s761_s4, %s761_s4 }
  0x21   : > { %p764_p8 = pnand %p762_p7, %p750_p0  ;;  %p771_p5 = por %p770_p6, %p769_p9 }
  0x23   : > { %p765_p11 = pneg %p764_p8 }
  0x25   : > { %p772_p10 = pnand %p771_p5, %p765_p11 }
  0x27   : > { %775 = shalt.err (!%p772_p10)
}
  0x28   : > { %s845_s5 = smov 64   ;;  %s846_s6 = smov 4  }
  0x29   : > { %687 = dma.hbm_to_vmem [thread:$0]  (!%p922_p12), %s1032_s1, 1792, %s107_s23, [#allocation3], %s845_s5, %s845_s5, %s846_s6  }
  0x2a   : > { %p1041_p13 = scmp.ne.s32.totalorder %s1039_s21, 0 }
  0x2b   : > { %p1042_p1 = scmp.eq.s32.totalorder (!%p1041_p13), %s886_s13, 0 }
  0x2c   : > { %129 = sbr.rel (%p1041_p13) target bundleno = 1275 (0x4fb), region = 28 }
  0x33   : > { %821 = dma.done.wait (%p1042_p1), [#allocation3], 1792   ;;  %p1043_p0 = pmov %p1042_p1 }
  0x34   : > { %v847_v0 = vmov 0.0   ;;  %vm848_vm0 = vmmov 0   ;;  %v732_v1 = vld [vmem:[#allocation2] sm:$0xff]   ;;  %v733_v2 = vld [vmem:[#allocation2 + $0x8] sm:$0xff]   ;;  %v734_v3 = vld [vmem:[#allocation2 + $0x10] sm:$0xff]   ;;  %p150_p5 = scmp.lt.s32.totalorder %s886_s13, 3  ;;  %v368_v28 = vlaneseq }
  0x35   : > { %823 = vsyncadd (%p1043_p0), [#allocation3], 4294965504  ;;  %630 = vmatprep.subr.bf16.mxu0 %v847_v0  ;;  %646 = vmatprep.mubr.msk.bf16.mxu0 %vm848_vm0, %v847_v0  ;;  %v740_v4 = vld [vmem:[#allocation2 + $0x48] sm:$0xff]   ;;  %v735_v5 = vld [vmem:[#allocation2 + $0x18] sm:$0xff]   ;;  %vm279_vm1 = vcmask 261120   ;;  %vm374_vm3 = vcmask 64512  }
  0x36   : > { %650 = vmatprep.subr.bf16.mxu1 %v847_v0  ;;  %654 = vmatprep.mubr.msk.bf16.mxu1 %vm848_vm0, %v847_v0  ;;  %v741_v6 = vld [vmem:[#allocation2 + $0x50] sm:$0xff]   ;;  %v736_v7 = vld [vmem:[#allocation2 + $0x20] sm:$0xff]   ;;  %v737_v8 = vld [vmem:[#allocation2 + $0x28] sm:$0xff]   ;;  %s151_s14 = scalar_select %p150_p5, %s886_s13, 3  ;;  %v369_v29 = vshrl.u32 %v368_v28, 7  ;;  %v371_v30 = vand.u32 127, %v368_v28 }
  0x37   : > { %631 = vmatpush3.bf16.msra.mxu0 %v732_v1  ;;  %651 = vmatpush3.bf16.msra.mxu1 %v740_v4  ;;  %v738_v9 = vld [vmem:[#allocation2 + $0x30] sm:$0xff]   ;;  %v739_v10 = vld [vmem:[#allocation2 + $0x38] sm:$0xff]   ;;  %v171_v12 = vld [vmem:[#allocation2 + $0x40] sm:$0xf]  ;;  %vm453_vm4 = vcmask 1043456   ;;  %s147_s23 = sand.u32 1, %s834_s10  }
  0x38   : > { %632 = vmatprep.subr.bf16.mxu0 %v847_v0  ;;  %652 = vmatprep.subr.bf16.mxu1 %v847_v0  ;;  %s590_s16 = sshll.u32 %s151_s14, 2  ;;  %v173_v13 = vunpack.c.l.bf16 %v171_v12  ;;  %v742_v22 = vld [vmem:[#allocation2 + $0x58] sm:$0xff]   ;;  %v743_v27 = vld [vmem:[#allocation2 + $0x60] sm:$0xff]   ;;  %vm372_vm2 = vcmp.le.s32.totalorder %v371_v30, %v369_v29  ;;  %v444_v53 = vld [vmem:[#allocation2 + $0x68] sm:$0x1]  ;;  %s589_s24 = sshll.u32 %s147_s23, 3 }
  0x39   : > { %s153_s22 = scalar_lea.vmem %s1031_s0, %s590_s16  ;;  %v445_v54 = vunpack.c.l.bf16 %v444_v53  ;;  %v448_v55 = vsub.s32 0, %v369_v29  ;;  %s608_s25 = sshll.u32 %s886_s13, 7 }
  0x3a   : > { %v172_v11 = vld [vmem:[%s153_s22] sm:$0xf]  ;;  %s149_s26 = scalar_lea.vmem [#allocation5], %s589_s24  ;;  %s989_s30 = scalar_lea.hbm %s1033_s2, %s608_s25 }
  0x3b   : > { %633 = vmatpush3.bf16.msra.mxu0 %v733_v2  ;;  %653 = vmatpush3.bf16.msra.mxu1 %v741_v6  ;;  %v449_v56 = vrot.slane %v445_v54, %v448_v55  ;;  %s512_s27 = sshll.u32 %s149_s26, 4  ;;  %s499_s3 = scalar_lea.sflag [#allocation4], %s147_s23  ;;  %s991_s27 = int_to_ptr.vmem [resolvable:$true] %s512_s27 }
  0x3c   : > { %634 = vmatprep.subr.bf16.mxu0 %v847_v0  ;;  %658 = vmatprep.subr.bf16.mxu1 %v847_v0  ;;  %s776_s13 = scalar_lea.vmem %s991_s27, 128  ;;  %p1044_p9 = scmp.ne.s32.totalorder %s1037_s19, 0 }
  0x3d   : > { %p777_p6 = scmp.ne.s32.totalorder %s991_s27, %s776_s13  ;;  %s849_s4 = smov [#allocation5]  }
  0x3e   : > { %s780_s5 = sshll.u32 %s849_s4, 4  ;;  %s781_s5 = int_to_ptr.vmem [resolvable:$false] %s780_s5 }
  0x3f   : > { %635 = vmatpush3.bf16.msra.mxu0 %v734_v3  ;;  %p778_p10 = pnand %p777_p6, %p1044_p9  ;;  %s782_s6 = scalar_lea.vmem %s781_s5, 256 }
  0x40   : > { %636 = vmatprep.subr.bf16.mxu0 %v847_v0  ;;  %p783_p2 = scmp.lt.s32.totalorder %s991_s27, %s781_s5  ;;  %p784_p3 = scmp.lt.s32.totalorder %s782_s6, %s776_s13 }
  0x41   : > { %p779_p12 = pneg %p778_p10 }
  0x42   : > { %p785_p4 = por %p784_p3, %p783_p2 }
  0x43   : > { %637 = vmatpush3.bf16.msra.mxu0 %v735_v5 }
  0x44   : > { %638 = vmatprep.subr.bf16.mxu0 %v847_v0  ;;  %p786_p7 = pnand %p785_p4, %p779_p12 }
  0x47   : > { %639 = vmatpush3.bf16.msra.mxu0 %v736_v7 }
  0x48   : > { %640 = vmatprep.subr.bf16.mxu0 %v847_v0 }
  0x4b   : > { %641 = vmatpush3.bf16.msra.mxu0 %v737_v8 }
  0x4c   : > { %642 = vmatprep.subr.bf16.mxu0 %v847_v0 }
  0x4f   : > { %643 = vmatpush3.bf16.msra.mxu0 %v738_v9 }
  0x50   : > { %644 = vmatprep.subr.bf16.mxu0 %v847_v0 }
  0x53   : > { %645 = vmatpush3.bf16.msra.mxu0 %v739_v10 }
  0x56   : > { %647 = vmatmul.mubr.bf16.vlgmr.msra.gmra.mrb[0].mxu0 %v172_v11 }
 0x129   : > { %v256_v14 = vpop.f32.mrb[0].mxu0 }
 0x12a   : > { %v257_v15 = vadd.f32 %v256_v14, %v173_v13  ;;  %v648_v16 = vpop.f32.mrb[1].mxu0 }
 0x12b   : > { %v259_v17 = vpop.f32.mrb[2].mxu0 }
 0x12c   : > { %v262_v18 = vpack.c.bf16 %v257_v15, %v257_v15  ;;  %v649_v19 = vpop.f32.mrb[3].mxu0 }
 0x12e   : > { %655 = vmatmul.mubr.msk.bf16.vlgmr.msra.gmra.mrb[0].mxu1 %vm279_vm1, %v262_v18  ;;  %v281_v20 = vsel %vm279_vm1, %v262_v18, 0 }
 0x12f   : > { %659 = vmatpush3.bf16.xpose.msra.mxu1 %v281_v20  ;;  %660 = vmatprep.mubr.msk.bf16.mxu1 %vm848_vm0, %v847_v0 }
 0x130   : > { %664 = vmatprep.subr.bf16.mxu1 %v847_v0 }
 0x201   : > { %v317_v21 = vpop.f32.mrb[0].mxu1 }
 0x202   : > { %v323_v23 = vpack.c.bf16 %v317_v21, %v317_v21  ;;  %v656_v24 = vpop.f32.mrb[1].mxu1 }
 0x203   : > { %v320_v25 = vpop.f32.mrb[2].mxu1 }
 0x204   : > { %v657_v26 = vpop.f32.mrb[3].mxu1  ;;  %661 = vmatmul.mubr.msk.bf16.vlgmr.msra.gmra.mrb[4].mxu1 %vm279_vm1, %v323_v23 }
 0x205   : > { %665 = vmatpush3.bf16.msra.mxu1 %v742_v22  ;;  %668 = vmatprep.mubr.msk.bf16.mxu1 %vm848_vm0, %v847_v0 }
 0x206   : > { %666 = vmatprep.subr.bf16.mxu1 %v847_v0 }
 0x209   : > { %667 = vmatpush3.bf16.msra.mxu1 %v743_v27 }
 0x20a   : > { %672 = vmatprep.subr.bf16.mxu1 %v847_v0 }
 0x20c   : > { %669 = vmatmul.mubr.msk.bf16.vlgmr.msra.gmra.mrb[8].mxu1 %vm279_vm1, %v262_v18 }
 0x20d   : > { %674 = vmatprep.mubr.msk.bf16.mxu1 %vm848_vm0, %v847_v0 }
 0x2d7   : > { %v361_v31 = vpop.f32.mrb[4].mxu1 }
 0x2d8   : > { %v367_v32 = vmul.f32 0.17677669, %v361_v31  ;;  %v662_v33 = vpop.f32.mrb[5].mxu1 }
 0x2d9   : > { %v364_v34 = vpop.f32.mrb[6].mxu1 }
 0x2da   : > { %v663_v35 = vpop.f32.mrb[7].mxu1  ;;  %v373_v36 = vsel %vm372_vm2, %v367_v32, -inf }
 0x2db   : > { %v375_v37 = vsel %vm374_vm3, %v373_v36, -inf }
 0x2dc   : > { %376 = vmax.xlane.f32.xlu0 %v375_v37 }
 0x2df   : > { %v436_v38 = vpop.f32.mrb[8].mxu1 }
 0x2e0   : > { %v443_v39 = vpack.c.bf16 %v436_v38, %v436_v38  ;;  %v670_v40 = vpop.f32.mrb[9].mxu1 }
 0x2e1   : > { %v439_v41 = vpop.f32.mrb[10].mxu1 }
 0x2e2   : > { %v455_v42 = vsel %vm453_vm4, %v443_v39, 0  ;;  %v671_v43 = vpop.f32.mrb[11].mxu1 }
 0x2e3   : > { %673 = vmatpush3.bf16.msra.mxu1 %v455_v42 }
 0x369   : > { %v377_v44 = vpop.xlane.xlu0 %376 }
 0x36a   : > { %v378_v45 = vsub.f32 %v373_v36, %v377_v44 }
 0x36c   : > { %v379_v46 = vmul.f32 1.442695, %v378_v45 }
 0x36e   : > { %744 = vpow2.f32 %v379_v46 }
 0x378   : > { %v745_v47 = vpop.eup %744 }
 0x379   : > { %v381_v48 = vsel %vm374_vm3, %v745_v47, 0.0 }
 0x37a   : > { %382 = vadd.xlane.f32.xlu0 %v381_v48 }
 0x407   : > { %v383_v49 = vpop.xlane.xlu0 %382 }
 0x408   : > { %746 = vrcp.f32 %v383_v49 }
 0x412   : > { %v747_v50 = vpop.eup %746 }
 0x413   : > { %v385_v51 = vmul.f32 %v747_v50, %v745_v47 }
 0x415   : > { %v442_v52 = vpack.c.bf16 %v385_v51, %v385_v51 }
 0x417   : > { %675 = vmatmul.mubr.msk.bf16.vlgmr.msra.gmra.mrb[12].mxu1 %vm374_vm3, %v442_v52 }
 0x4ea   : > { %v491_v57 = vpop.f32.mrb[12].mxu1 }
 0x4eb   : > { %v492_v58 = vadd.f32 %v491_v57, %v449_v56  ;;  %v676_v59 = vpop.f32.mrb[13].mxu1 }
 0x4ec   : > { %v494_v60 = vpop.f32.mrb[14].mxu1 }
 0x4ed   : > { %497 = vst [vmem:[%s149_s26] sm:$0xff] %v492_v58  ;;  %v677_v61 = vpop.f32.mrb[15].mxu1 }
 0x4ee   : > { %789 = shalt.err (!%p786_p7)
}
 0x4ef   : > { %s790_s7 = scalar_lea.hbm %s989_s30, 128  ;;  %s794_s16 = scalar_lea.hbm %s1033_s2, 512 }
 0x4f0   : > { %p791_p8 = scmp.ne.s32.totalorder %s989_s30, %s790_s7  ;;  %p795_p1 = scmp.lt.u32.totalorder %s989_s30, %s1033_s2 }
 0x4f1   : > { %p796_p0 = scmp.lt.u32.totalorder %s794_s16, %s790_s7  ;;  %p798_p6 = scmp.lt.u32.totalorder %s790_s7, %s989_s30 }
 0x4f2   : > { %p792_p11 = pnand %p791_p8, %p1044_p9 }
 0x4f3   : > { %p797_p5 = por %p796_p0, %p795_p1 }
 0x4f4   : > { %p793_p13 = pneg %p792_p11 }
 0x4f5   : > { %p799_p10 = por %p798_p6, %p797_p5 }
 0x4f7   : > { %p800_p12 = pnand %p799_p10, %p793_p13 }
 0x4f9   : > { %803 = shalt.err (!%p800_p12)
}
 0x4fa   : > { %682 = dma.vmem_to_hbm [thread:$0]  (%p1044_p9), %s991_s27, 128, %s989_s30, %s499_s3  }
 0x4fb PF: > { %p694_p2 = scmp.ge.s32.totalorder %s842_s12, 2  ;;  %s524_s22 = sand.u32 1, %s830_s9  }
 0x4fc   : > { %p1045_p3 = scmp.ne.s32.totalorder %s1038_s20, 0  ;;  %s525_s23 = scalar_lea.sflag [#allocation4], %s524_s22 }
 0x4fe   : > { %p689_p4 = pnand %p694_p2, %p1045_p3 }
 0x500   : > { %825 = dma.done.wait (!%p689_p4), %s525_s23, 128  }
 0x501   : > { %827 = vsyncadd (!%p689_p4), %s525_s23, 4294967168  ;;  %p13_p7 = scmp.ge.s32.totalorder %s890_s15, 6   ;;  %s1046_s9 = smov %s834_s10 }
 0x502   : > { %s1047_s10 = smov %s838_s11  ;;  %s1048_s11 = smov %s901_s18 }
 0x503   : > { %s1049_s12 = smov %s890_s15  ;;  %15 = sbr.rel (!%p13_p7) target bundleno = 4 (0x4), region = 68 }
 0x50a   :  { %530 = vsyncpa [#allocation3], 1 }
 0x50b   :  { %532 = vsyncpa [#allocation3 + $0x1], 1 }
 0x50c   :  { %533 = vsyncpa [#allocation4], 1 }
 0x50d   :  { %535 = vsyncpa [#allocation4 + $0x1], 1 }

</bundles_post_ra>
